<compile_context>
chip_gen: v7x
topology: tpu7x:2x2x1
jax: 0.10.0
libtpu: 0.0.40
codegen_flags: <defaults>
</compile_context>

<pallas_src>
import functools

import jax
import jax.numpy as jnp
from jax.experimental import pallas as pl
from jax.experimental.pallas import tpu as pltpu

LANE = 128  # TPU lane width; only stored (output) feature dims are padded to it.


def _round_up(n, m):
    return (n + m - 1) // m * m


# ----------------------------------------------------------------------------
# Fused kernel: the whole [Linear -> ReLU] stack for one batch tile.
# refs = (x_ref, w_1, ..., w_L, bias_ref, o_ref)
#   x_ref    : [TILE_B, Din]            (caller dtype; cast to compute_dtype here)
#   w_l      : [Din_l, Dout_l]          (compute_dtype; only the LAST layer's
#                                        Dout is padded to 128, with zero cols)
#   bias_ref : [num_layers, 128]        (f32, zero-padded rows)
#   o_ref    : [TILE_B, Dout_pad]       (store dtype, lane-dense 128-wide)
# Padded weight columns / bias entries are exact zeros, so padded output
# columns stay exactly 0 through Linear+ReLU -> numerics match the unpadded net.
# ----------------------------------------------------------------------------
def _fused_mlp_kernel(*refs, compute_dtype, epilogue_dtype):
    x_ref = refs[0]
    o_ref = refs[-1]
    bias_ref = refs[-2]
    w_refs = refs[1:-2]

    h = x_ref[...]
    for l, w_ref in enumerate(w_refs):            # unrolled at trace time
        width = w_ref.shape[1]                    # static per-layer width
        acc = jnp.dot(h.astype(compute_dtype), w_ref[...],
                      preferred_element_type=jnp.float32)     # MXU, f32 acc
        b = bias_ref[l:l + 1, :width].astype(epilogue_dtype)  # static slice
        h = jnp.maximum(acc.astype(epilogue_dtype) + b, 0)    # bias + ReLU
    o_ref[...] = h.astype(o_ref.dtype)            # full-width unmasked store


# ----------------------------------------------------------------------------
# Parameter init (mirrors nn.Linear: weight [out, in], bias [out], U(-k, k)).
# Returns:
#   raw_params    : list of (W^T [in, out] f32, bias [out] f32)  - for reference
#   kernel_params : (tuple of bf16 weights in kernel layout, [L,128] f32 biases)
# ----------------------------------------------------------------------------
def init_mlp_params(key, input_dim, layer_units, compute_dtype=jnp.bfloat16):
    raw_params = []
    curr = input_dim
    for units in layer_units:
        key, wk, bk = jax.random.split(key, 3)
        bound = 1.0 / float(curr) ** 0.5
        w_out_in = jax.random.uniform(wk, (units, curr), jnp.float32, -bound, bound)
        bias = jax.random.uniform(bk, (units,), jnp.float32, -bound, bound)
        raw_params.append((w_out_in.T, bias))     # [in, out], [out]
        curr = units

    kernel_weights = []
    bias_rows = []
    last = len(raw_params) - 1
    for i, (wt, b) in enumerate(raw_params):
        din, dout = wt.shape
        dout_k = _round_up(dout, LANE) if i == last else dout  # pad ONLY last layer
        w_pad = jnp.zeros((din, dout_k), jnp.float32).at[:, :dout].set(wt)
        kernel_weights.append(w_pad.astype(compute_dtype))
        bias_rows.append(jnp.zeros((LANE,), jnp.float32).at[:dout].set(b))
    bias_mat = jnp.stack(bias_rows)               # [num_layers, 128] f32, one DMA
    return raw_params, (tuple(kernel_weights), bias_mat)


# ----------------------------------------------------------------------------
# Forward pass: one fused, batch-tiled pallas_call.
# ----------------------------------------------------------------------------
def mlp_backbone_forward(x, kernel_params, output_dim, *, tile_b=1024,
                         compute_dtype=jnp.bfloat16, epilogue_dtype=jnp.float32,
                         store_dtype=jnp.bfloat16):
    weights, bias_mat = kernel_params
    batch, din = x.shape
    out_pad = weights[-1].shape[1]                # final layer, 128-padded

    # Batch tiling: sublane-aligned tiles up to tile_b, scaling with the batch.
    # batch <= tile_b -> one tile covering the whole (padded) batch; larger
    # batches give grid >= 2 so v7x's two TensorCores both receive work.
    tb = min(tile_b, _round_up(batch, 8))
    bp = _round_up(batch, tb)
    if bp != batch:
        x = jnp.pad(x, ((0, bp - batch), (0, 0)))

    in_specs = [pl.BlockSpec((tb, din), lambda i: (i, 0))]
    flat_args = [x]
    for w in weights:
        # Constant index_map -> weights stay VMEM-resident across grid steps.
        in_specs.append(pl.BlockSpec(w.shape, lambda i: (0, 0)))
        flat_args.append(w)
    in_specs.append(pl.BlockSpec(bias_mat.shape, lambda i: (0, 0)))
    flat_args.append(bias_mat)

    # Advisory cost estimate for the XLA scheduler.
    flops = sum(2 * bp * w.shape[0] * w.shape[1] for w in weights)
    bytes_accessed = (x.size * x.dtype.itemsize
                      + sum(w.size * w.dtype.itemsize for w in weights)
                      + bias_mat.size * bias_mat.dtype.itemsize
                      + bp * out_pad * jnp.dtype(store_dtype).itemsize)
    cost = pl.CostEstimate(flops=int(flops), transcendentals=0,
                           bytes_accessed=int(bytes_accessed))

    kernel = functools.partial(_fused_mlp_kernel, compute_dtype=compute_dtype,
                               epilogue_dtype=epilogue_dtype)
    out_padded = pl.pallas_call(
        kernel,
        out_shape=jax.ShapeDtypeStruct((bp, out_pad), store_dtype),
        grid=(bp // tb,),
        in_specs=in_specs,
        out_specs=pl.BlockSpec((tb, out_pad), lambda i: (i, 0)),
        compiler_params=pltpu.CompilerParams(
            dimension_semantics=("parallel",)),   # v7x: shard batch tiles over TCs
        cost_estimate=cost,
    )(*flat_args)

    # One fused slice + convert: strips batch padding + final-layer lane padding
    # and returns the module's dtype (bf16 writeback -> half the HBM traffic).
    return out_padded[:batch, :output_dim].astype(x.dtype)


if __name__ == "__main__":
    # Config (consistent with MLPBackbone.__init__):
    #   continuous_dim=16, embedded_cat_dim=16 -> input_dim=32
    #   layers="64-32-16", activation="ReLU", use_batch_norm=False, dropout=0.0
    continuous_dim = 16
    embedded_cat_dim = 16
    input_dim = continuous_dim + embedded_cat_dim
    layer_units = [64, 32, 16]

    key = jax.random.PRNGKey(0)
    key, xk = jax.random.split(key)
    batch = 300  # non-multiple of the tile: exercises batch padding + output slice
    x = jax.random.normal(xk, (batch, input_dim), jnp.float32)

    raw_params, kernel_params = init_mlp_params(key, input_dim, layer_units)

    # Reference: same Linear -> ReLU stack in plain JAX with matching numerics
    # (bf16 matmul inputs, f32 accumulation, final bf16 store rounding).
    ref = x
    for w, b in raw_params:
        ref = jnp.maximum(
            jnp.dot(ref.astype(jnp.bfloat16), w.astype(jnp.bfloat16),
                    preferred_element_type=jnp.float32) + b, 0.0)
    ref = ref.astype(jnp.bfloat16).astype(jnp.float32)

    # (a) default big-tile path: single tile covering the whole padded batch.
    fwd_big = jax.jit(functools.partial(mlp_backbone_forward,
                                        output_dim=layer_units[-1]))
    out_big = jax.block_until_ready(fwd_big(x, kernel_params))

    # (b) small-tile path (grid of 3 steps) to exercise multi-step pipelining.
    fwd_small = jax.jit(functools.partial(mlp_backbone_forward,
                                          output_dim=layer_units[-1],
                                          tile_b=128))
    out_small = jax.block_until_ready(fwd_small(x, kernel_params))

    for out in (out_big, out_small):
        assert out.shape == (batch, layer_units[-1])
        assert out.dtype == jnp.float32
        assert jnp.allclose(out, ref, atol=2e-2, rtol=2e-2), \
            float(jnp.max(jnp.abs(out - ref)))

    print("KERNEL_OK")
</pallas_src>

<mosaic_0001>
module attributes {stable_mosaic.version = 11 : i64} {
  func.func @_fused_mlp_kernel(%arg0: i32, %arg1: memref<304x32xf32, #tpu.memory_space<vmem>>, %arg2: memref<32x64xbf16, #tpu.memory_space<vmem>>, %arg3: memref<64x32xbf16, #tpu.memory_space<vmem>>, %arg4: memref<32x128xbf16, #tpu.memory_space<vmem>>, %arg5: memref<3x128xf32, #tpu.memory_space<vmem>>, %arg6: memref<304x128xbf16, #tpu.memory_space<vmem>>) attributes {dimension_semantics = [#tpu.dimension_semantics<parallel>], iteration_bounds = array<i64: 1>, scalar_prefetch = 0 : i64, scratch_operands = 0 : i64, tpu.core_type = #tpu.core_type<tc>, window_params = [{transform_indices = @transform_0, window_bounds = array<i64: 304, 32>}, {pipeline_mode = #tpu.pipeline_mode<synchronous>, transform_indices = @transform_1, window_bounds = array<i64: 32, 64>}, {pipeline_mode = #tpu.pipeline_mode<synchronous>, transform_indices = @transform_2, window_bounds = array<i64: 64, 32>}, {pipeline_mode = #tpu.pipeline_mode<synchronous>, transform_indices = @transform_3, window_bounds = array<i64: 32, 128>}, {pipeline_mode = #tpu.pipeline_mode<synchronous>, transform_indices = @transform_4, window_bounds = array<i64: 3, 128>}, {transform_indices = @transform_5, window_bounds = array<i64: 304, 128>}]} {
    %c0 = arith.constant 0 : index
    %c0_0 = arith.constant 0 : index
    %0 = vector.load %arg1[%c0, %c0_0] : memref<304x32xf32, #tpu.memory_space<vmem>>, vector<304x32xf32>
    %1 = arith.truncf %0 : vector<304x32xf32> to vector<304x32xbf16>
    %c0_1 = arith.constant 0 : index
    %c0_2 = arith.constant 0 : index
    %2 = vector.load %arg2[%c0_1, %c0_2] : memref<32x64xbf16, #tpu.memory_space<vmem>>, vector<32x64xbf16>
    %cst = arith.constant dense<0.000000e+00> : vector<304x64xf32>
    %3 = tpu.matmul %1, %2, %cst {dimension_numbers = #tpu.dot_dimension_numbers<[1], [0], [0], [1], [0, 0, 1, 1], [], []>} : vector<304x32xbf16>, vector<32x64xbf16>, vector<304x64xf32> -> vector<304x64xf32>
    %c0_3 = arith.constant 0 : index
    %c0_4 = arith.constant 0 : index
    %4 = vector.load %arg5[%c0_3, %c0_4] : memref<3x128xf32, #tpu.memory_space<vmem>>, vector<1x64xf32>
    %5 = vector.broadcast %4 : vector<1x64xf32> to vector<304x64xf32>
    %6 = arith.addf %3, %5 : vector<304x64xf32>
    %cst_5 = arith.constant 0.000000e+00 : f32
    %7 = vector.broadcast %cst_5 : f32 to vector<304x64xf32>
    %8 = arith.maximumf %6, %7 : vector<304x64xf32>
    %9 = arith.truncf %8 : vector<304x64xf32> to vector<304x64xbf16>
    %c0_6 = arith.constant 0 : index
    %c0_7 = arith.constant 0 : index
    %10 = vector.load %arg3[%c0_6, %c0_7] : memref<64x32xbf16, #tpu.memory_space<vmem>>, vector<64x32xbf16>
    %cst_8 = arith.constant dense<0.000000e+00> : vector<304x32xf32>
    %11 = tpu.matmul %9, %10, %cst_8 {dimension_numbers = #tpu.dot_dimension_numbers<[1], [0], [0], [1], [0, 0, 1, 1], [], []>} : vector<304x64xbf16>, vector<64x32xbf16>, vector<304x32xf32> -> vector<304x32xf32>
    %c1 = arith.constant 1 : index
    %c0_9 = arith.constant 0 : index
    %12 = vector.load %arg5[%c1, %c0_9] : memref<3x128xf32, #tpu.memory_space<vmem>>, vector<1x32xf32>
    %13 = vector.broadcast %12 : vector<1x32xf32> to vector<304x32xf32>
    %14 = arith.addf %11, %13 : vector<304x32xf32>
    %cst_10 = arith.constant 0.000000e+00 : f32
    %15 = vector.broadcast %cst_10 : f32 to vector<304x32xf32>
    %16 = arith.maximumf %14, %15 : vector<304x32xf32>
    %17 = arith.truncf %16 : vector<304x32xf32> to vector<304x32xbf16>
    %c0_11 = arith.constant 0 : index
    %c0_12 = arith.constant 0 : index
    %18 = vector.load %arg4[%c0_11, %c0_12] : memref<32x128xbf16, #tpu.memory_space<vmem>>, vector<32x128xbf16>
    %cst_13 = arith.constant dense<0.000000e+00> : vector<304x128xf32>
    %19 = tpu.matmul %17, %18, %cst_13 {dimension_numbers = #tpu.dot_dimension_numbers<[1], [0], [0], [1], [0, 0, 1, 1], [], []>} : vector<304x32xbf16>, vector<32x128xbf16>, vector<304x128xf32> -> vector<304x128xf32>
    %c2 = arith.constant 2 : index
    %c0_14 = arith.constant 0 : index
    %20 = vector.load %arg5[%c2, %c0_14] : memref<3x128xf32, #tpu.memory_space<vmem>>, vector<1x128xf32>
    %21 = vector.broadcast %20 : vector<1x128xf32> to vector<304x128xf32>
    %22 = arith.addf %19, %21 : vector<304x128xf32>
    %cst_15 = arith.constant 0.000000e+00 : f32
    %23 = vector.broadcast %cst_15 : f32 to vector<304x128xf32>
    %24 = arith.maximumf %22, %23 : vector<304x128xf32>
    %25 = arith.truncf %24 : vector<304x128xf32> to vector<304x128xbf16>
    %c0_16 = arith.constant 0 : index
    %c0_17 = arith.constant 0 : index
    %26 = vector.load %arg6[%c0_16, %c0_17] : memref<304x128xbf16, #tpu.memory_space<vmem>>, vector<304x128xbf16>
    tpu.vector_store %arg6[%c0_16, %c0_17], %25 {strides = array<i32>} : memref<304x128xbf16, #tpu.memory_space<vmem>>, vector<304x128xbf16>,
    return
  }
  func.func @transform_0(%arg0: i32) -> (i32, i32) {
    %c0_i32 = arith.constant 0 : i32
    %c0_i32_0 = arith.constant 0 : i32
    return %arg0, %c0_i32 : i32, i32
  }
  func.func @transform_1(%arg0: i32) -> (i32, i32) {
    %c0_i32 = arith.constant 0 : i32
    %c0_i32_0 = arith.constant 0 : i32
    %c0_i32_1 = arith.constant 0 : i32
    return %c0_i32, %c0_i32_0 : i32, i32
  }
  func.func @transform_2(%arg0: i32) -> (i32, i32) {
    %c0_i32 = arith.constant 0 : i32
    %c0_i32_0 = arith.constant 0 : i32
    %c0_i32_1 = arith.constant 0 : i32
    return %c0_i32, %c0_i32_0 : i32, i32
  }
  func.func @transform_3(%arg0: i32) -> (i32, i32) {
    %c0_i32 = arith.constant 0 : i32
    %c0_i32_0 = arith.constant 0 : i32
    %c0_i32_1 = arith.constant 0 : i32
    return %c0_i32, %c0_i32_0 : i32, i32
  }
  func.func @transform_4(%arg0: i32) -> (i32, i32) {
    %c0_i32 = arith.constant 0 : i32
    %c0_i32_0 = arith.constant 0 : i32
    %c0_i32_1 = arith.constant 0 : i32
    return %c0_i32, %c0_i32_0 : i32, i32
  }
  func.func @transform_5(%arg0: i32) -> (i32, i32) {
    %c0_i32 = arith.constant 0 : i32
    %c0_i32_0 = arith.constant 0 : i32
    return %arg0, %c0_i32 : i32, i32
  }
}

</mosaic_0001>

<bundles_post_ra>
// kernel: mlp_backbone_forward.1
= control target key start
LH: loop header
LB: loop body
LE: loop exit
PB: predicated region body
PF: predicated region fallthrough
CT: control target
= control target key end

     0   :  { %v1811_v0 = vmov 0.0   ;;  %vm1812_vm0 = vmmov 0   ;;  %vm99_vm1 = vcmask 261120   ;;  %vm436_vm2 = vcmask 523264   ;;  %s2366_s1 = inlined_call_operand.vmem [shape: bf16[32,64], index: 1, kind: input, shape index: {}]   ;;  %s2367_s0 = inlined_call_operand.vmem [shape: f32[304,32], index: 0, kind: input, shape index: {}]   ;;  %s2368_s2 = inlined_call_operand.vmem [shape: bf16[64,32], index: 2, kind: input, shape index: {}]   ;;  %s2369_s4 = inlined_call_operand.vmem [shape: f32[3,128], index: 4, kind: input, shape index: {}]   ;;  %s2370_s3 = inlined_call_operand.vmem [shape: bf16[32,128], index: 3, kind: input, shape index: {}]   ;;  %s2371_s5 = inlined_call_operand.vmem [shape: bf16[304,128], index: 5, kind: output, shape index: {}]  }
   0x1   :  { %1553 = vmatprep.subr.bf16.mxu0 %v1811_v0  ;;  %v1803_v1 = vld [vmem:[%s2366_s1] sm:$0xff]   ;;  %1557 = vmatprep.mubr.msk.bf16.mxu0 %vm1812_vm0, %v1811_v0  ;;  %v1804_v2 = vld [vmem:[%s2366_s1 + $0x8] sm:$0xff]   ;;  %v23_v8 = vld [vmem:[%s2367_s0 + $0x10] sm:$0xff] }
   0x2   :  { %1797 = vmatprep.subr.bf16.mxu1 %v1811_v0  ;;  %1597 = vmatprep.mubr.msk.bf16.mxu1 %vm1812_vm0, %v1811_v0  ;;  %v21_v3 = vld [vmem:[%s2367_s0] sm:$0xff]  ;;  %v22_v4 = vld [vmem:[%s2367_s0 + $0x8] sm:$0xff]  ;;  %v24_v9 = vld [vmem:[%s2367_s0 + $0x18] sm:$0xff] }
   0x3   :  { %1554 = vmatpush3.bf16.msra.mxu0 %v1803_v1  ;;  %1799 = vmatpush3.bf16.msra.mxu1 %v1803_v1  ;;  %v59_v5 = vpack.c.bf16 %v22_v4, %v21_v3  ;;  %v41_v6 = vld [vmem:[%s2367_s0 + $0xa0] sm:$0xff]  ;;  %v42_v7 = vld [vmem:[%s2367_s0 + $0xa8] sm:$0xff]  ;;  %v60_v11 = vpack.c.bf16 %v24_v9, %v23_v8  ;;  %v43_v12 = vld [vmem:[%s2367_s0 + $0xb0] sm:$0xff] }
   0x4   :  { %1555 = vmatprep.subr.bf16.mxu0 %v1811_v0  ;;  %1798 = vmatprep.subr.bf16.mxu1 %v1811_v0  ;;  %v69_v10 = vpack.c.bf16 %v42_v7, %v41_v6  ;;  %v44_v13 = vld [vmem:[%s2367_s0 + $0xb8] sm:$0xff]  ;;  %v1805_v14 = vld [vmem:[%s2368_s2] sm:$0xff]   ;;  %v1806_v16 = vld [vmem:[%s2368_s2 + $0x8] sm:$0xff]  }
   0x5   :  { %v70_v15 = vpack.c.bf16 %v44_v13, %v43_v12  ;;  %v25_v17 = vld [vmem:[%s2367_s0 + $0x20] sm:$0xff]  ;;  %v26_v18 = vld [vmem:[%s2367_s0 + $0x28] sm:$0xff]  ;;  %v1807_v22 = vld [vmem:[%s2368_s2 + $0x10] sm:$0xff]  }
   0x6   :  { %v61_v19 = vpack.c.bf16 %v26_v18, %v25_v17  ;;  %v45_v20 = vld [vmem:[%s2367_s0 + $0xc0] sm:$0xff]  ;;  %v46_v21 = vld [vmem:[%s2367_s0 + $0xc8] sm:$0xff]  ;;  %v1808_v24 = vld [vmem:[%s2368_s2 + $0x18] sm:$0xff]  }
   0x7   :  { %1556 = vmatpush3.bf16.msra.mxu0 %v1804_v2  ;;  %1800 = vmatpush3.bf16.msra.mxu1 %v1804_v2  ;;  %v71_v23 = vpack.c.bf16 %v46_v21, %v45_v20  ;;  %v27_v25 = vld [vmem:[%s2367_s0 + $0x30] sm:$0xff]  ;;  %v28_v26 = vld [vmem:[%s2367_s0 + $0x38] sm:$0xff]  ;;  %v29_v31 = vld [vmem:[%s2367_s0 + $0x40] sm:$0xff] }
   0x8   :  { %1633 = vmatprep.subr.bf16.mxu1 %v1811_v0  ;;  %1717 = vmatprep.subr.bf16.mxu0 %v1811_v0  ;;  %v62_v27 = vpack.c.bf16 %v28_v26, %v27_v25  ;;  %v47_v28 = vld [vmem:[%s2367_s0 + $0xd0] sm:$0xff]  ;;  %v48_v29 = vld [vmem:[%s2367_s0 + $0xd8] sm:$0xff]  ;;  %v30_v32 = vld [vmem:[%s2367_s0 + $0x48] sm:$0xff] }
   0x9   :  { %v72_v30 = vpack.c.bf16 %v48_v29, %v47_v28  ;;  %v63_v33 = vpack.c.bf16 %v30_v32, %v29_v31  ;;  %v49_v34 = vld [vmem:[%s2367_s0 + $0xe0] sm:$0xff]  ;;  %v50_v35 = vld [vmem:[%s2367_s0 + $0xe8] sm:$0xff]  ;;  %v31_v37 = vld [vmem:[%s2367_s0 + $0x50] sm:$0xff] }
   0xa   :  { %1558 = vmatmul.mubr.msk.bf16.vlgmr.msra.gmra.mrb[0].mxu0 %vm99_vm1, %v59_v5  ;;  %1598 = vmatmul.mubr.msk.bf16.vlgmr.msra.gmra.mrb[0].mxu1 %vm99_vm1, %v69_v10  ;;  %v73_v36 = vpack.c.bf16 %v50_v35, %v49_v34  ;;  %v32_v38 = vld [vmem:[%s2367_s0 + $0x58] sm:$0xff]  ;;  %v51_v40 = vld [vmem:[%s2367_s0 + $0xf0] sm:$0xff]  ;;  %v33_v43 = vld [vmem:[%s2367_s0 + $0x60] sm:$0xff] }
   0xb   :  { %1561 = vmatprep.mubr.msk.bf16.mxu0 %vm1812_vm0, %v1811_v0  ;;  %1601 = vmatprep.mubr.msk.bf16.mxu1 %vm1812_vm0, %v1811_v0  ;;  %v64_v39 = vpack.c.bf16 %v32_v38, %v31_v37  ;;  %v52_v41 = vld [vmem:[%s2367_s0 + $0xf8] sm:$0xff]  ;;  %v34_v44 = vld [vmem:[%s2367_s0 + $0x68] sm:$0xff]  ;;  %v53_v46 = vld [vmem:[%s2367_s0 + $0x100] sm:$0xff] }
   0xc   :  { %1634 = vmatpush3.bf16.msra.mxu1 %v1805_v14  ;;  %v74_v42 = vpack.c.bf16 %v52_v41, %v51_v40  ;;  %v65_v45 = vpack.c.bf16 %v34_v44, %v33_v43  ;;  %v54_v47 = vld [vmem:[%s2367_s0 + $0x108] sm:$0xff]  ;;  %v35_v49 = vld [vmem:[%s2367_s0 + $0x70] sm:$0xff]  ;;  %v36_v50 = vld [vmem:[%s2367_s0 + $0x78] sm:$0xff] }
   0xd   :  { %1635 = vmatprep.subr.bf16.mxu1 %v1811_v0  ;;  %v75_v48 = vpack.c.bf16 %v54_v47, %v53_v46  ;;  %v66_v51 = vpack.c.bf16 %v36_v50, %v35_v49  ;;  %v55_v52 = vld [vmem:[%s2367_s0 + $0x110] sm:$0xff]  ;;  %v56_v53 = vld [vmem:[%s2367_s0 + $0x118] sm:$0xff]  ;;  %v37_v55 = vld [vmem:[%s2367_s0 + $0x80] sm:$0xff] }
   0xe   :  { %v76_v54 = vpack.c.bf16 %v56_v53, %v55_v52  ;;  %v38_v56 = vld [vmem:[%s2367_s0 + $0x88] sm:$0xff]  ;;  %v57_v58 = vld [vmem:[%s2367_s0 + $0x120] sm:$0xff]  ;;  %v39_v61 = vld [vmem:[%s2367_s0 + $0x90] sm:$0xff] }
   0xf   :  { %v67_v57 = vpack.c.bf16 %v38_v56, %v37_v55  ;;  %v58_v59 = vld [vmem:[%s2367_s0 + $0x128] sm:$0xff]  ;;  %v40_v62 = vld [vmem:[%s2367_s0 + $0x98] sm:$0xff]  ;;  %v2048_v1 = vld [vmem:[%s2369_s4] ss:$0 sm:$0xff] }
  0x10   :  { %1636 = vmatpush3.bf16.msra.mxu1 %v1806_v16  ;;  %v77_v60 = vpack.c.bf16 %v58_v59, %v57_v58  ;;  %v68_v63 = vpack.c.bf16 %v40_v62, %v39_v61  ;;  %v1810_v59 = vld [vmem:[%s2370_s3 + $0x8] sm:$0xff]  }
  0x11   :  { %1637 = vmatprep.subr.bf16.mxu1 %v1811_v0 }
  0x12   :  { %1562 = vmatmul.mubr.msk.bf16.gmra.mrb[4].mxu0 %vm99_vm1, %v60_v11  ;;  %1602 = vmatmul.mubr.msk.bf16.gmra.mrb[4].mxu1 %vm99_vm1, %v70_v15 }
  0x13   :  { %1565 = vmatprep.mubr.msk.bf16.mxu0 %vm1812_vm0, %v1811_v0  ;;  %1605 = vmatprep.mubr.msk.bf16.mxu1 %vm1812_vm0, %v1811_v0 }
  0x14   :  { %1638 = vmatpush3.bf16.msra.mxu1 %v1807_v22 }
  0x15   :  { %1639 = vmatprep.subr.bf16.mxu1 %v1811_v0 }
  0x18   :  { %1640 = vmatpush3.bf16.msra.mxu1 %v1808_v24 }
  0x1a   :  { %1566 = vmatmul.mubr.msk.bf16.gmra.mrb[8].mxu0 %vm99_vm1, %v61_v19  ;;  %1606 = vmatmul.mubr.msk.bf16.gmra.mrb[8].mxu1 %vm99_vm1, %v71_v23 }
  0x1b   :  { %1569 = vmatprep.mubr.msk.bf16.mxu0 %vm1812_vm0, %v1811_v0  ;;  %1609 = vmatprep.mubr.msk.bf16.mxu1 %vm1812_vm0, %v1811_v0 }
  0x22   :  { %1570 = vmatmul.mubr.msk.bf16.gmra.mrb[12].mxu0 %vm99_vm1, %v62_v27  ;;  %1610 = vmatmul.mubr.msk.bf16.gmra.mrb[12].mxu1 %vm99_vm1, %v72_v30 }
  0x23   :  { %1573 = vmatprep.mubr.msk.bf16.mxu0 %vm1812_vm0, %v1811_v0  ;;  %1613 = vmatprep.mubr.msk.bf16.mxu1 %vm1812_vm0, %v1811_v0 }
  0x2a   :  { %1574 = vmatmul.mubr.msk.bf16.gmra.mrb[16].mxu0 %vm99_vm1, %v63_v33  ;;  %1614 = vmatmul.mubr.msk.bf16.gmra.mrb[16].mxu1 %vm99_vm1, %v73_v36 }
  0x2b   :  { %1577 = vmatprep.mubr.msk.bf16.mxu0 %vm1812_vm0, %v1811_v0  ;;  %1617 = vmatprep.mubr.msk.bf16.mxu1 %vm1812_vm0, %v1811_v0 }
  0x32   :  { %1578 = vmatmul.mubr.msk.bf16.gmra.mrb[20].mxu0 %vm99_vm1, %v64_v39  ;;  %1618 = vmatmul.mubr.msk.bf16.gmra.mrb[20].mxu1 %vm99_vm1, %v74_v42  ;;  %v1809_v42 = vld [vmem:[%s2370_s3] sm:$0xff]  }
  0x33   :  { %1581 = vmatprep.mubr.msk.bf16.mxu0 %vm1812_vm0, %v1811_v0  ;;  %1621 = vmatprep.mubr.msk.bf16.mxu1 %vm1812_vm0, %v1811_v0 }
  0x34   :  { %1718 = vmatpush3.bf16.msra.mxu0 %v1809_v42 }
  0x35   :  { %1719 = vmatprep.subr.bf16.mxu0 %v1811_v0 }
  0x38   :  { %1720 = vmatpush3.bf16.msra.mxu0 %v1810_v59 }
  0x3a   :  { %1582 = vmatmul.mubr.msk.bf16.gmra.mrb[24].mxu0 %vm99_vm1, %v65_v45  ;;  %1622 = vmatmul.mubr.msk.bf16.gmra.mrb[24].mxu1 %vm99_vm1, %v75_v48 }
  0x3b   :  { %1585 = vmatprep.mubr.msk.bf16.mxu0 %vm1812_vm0, %v1811_v0  ;;  %1625 = vmatprep.mubr.msk.bf16.mxu1 %vm1812_vm0, %v1811_v0 }
  0x42   :  { %1586 = vmatmul.mubr.msk.bf16.gmra.mrb[28].mxu0 %vm99_vm1, %v66_v51  ;;  %1626 = vmatmul.mubr.msk.bf16.gmra.mrb[28].mxu1 %vm99_vm1, %v76_v54 }
  0x43   :  { %1589 = vmatprep.mubr.msk.bf16.mxu0 %vm1812_vm0, %v1811_v0  ;;  %1629 = vmatprep.mubr.msk.bf16.mxu1 %vm1812_vm0, %v1811_v0 }
  0x4a   :  { %1590 = vmatmul.mubr.msk.bf16.gmra.mrb[32].mxu0 %vm99_vm1, %v67_v57  ;;  %1630 = vmatmul.mubr.msk.bf16.gmra.mrb[32].mxu1 %vm99_vm1, %v77_v60 }
  0x4b   :  { %1593 = vmatprep.mubr.msk.bf16.mxu0 %vm1812_vm0, %v1811_v0  ;;  %1641 = vmatprep.mubr.msk.bf16.mxu1 %vm1812_vm0, %v1811_v0 }
  0x52   :  { %1594 = vmatmul.mubr.msk.bf16.gmra.mrb[36].mxu0 %vm99_vm1, %v68_v63 }
  0x53   :  { %1721 = vmatprep.mubr.msk.bf16.mxu0 %vm1812_vm0, %v1811_v0 }
  0xdd   :  { %v191_v2 = vpop.f32.mrb[0].mxu0  ;;  %v271_v8 = vpop.f32.mrb[0].mxu1 }
  0xde   :  { %v192_v3 = vadd.f32 %v2048_v1, %v191_v2  ;;  %v1559_v4 = vpop.f32.mrb[1].mxu0  ;;  %v272_v9 = vadd.f32 %v2048_v1, %v271_v8  ;;  %v1599_v10 = vpop.f32.mrb[1].mxu1 }
  0xdf   :  { %v194_v5 = vpop.f32.mrb[2].mxu0  ;;  %v274_v13 = vpop.f32.mrb[2].mxu1 }
  0xe0   :  { %v195_v6 = vadd.f32 %v2048_v1, %v194_v5  ;;  %v1560_v7 = vpop.f32.mrb[3].mxu0  ;;  %v342_v11 = vmax.f32 %v192_v3, 0.0  ;;  %v362_v14 = vmax.f32 %v272_v9, 0.0  ;;  %v275_v15 = vadd.f32 %v2048_v1, %v274_v13  ;;  %v1600_v16 = vpop.f32.mrb[3].mxu1 }
  0xe2   :  { %v343_v12 = vmax.f32 %v195_v6, 0.0  ;;  %v363_v19 = vmax.f32 %v275_v15, 0.0 }
  0xe4   :  { %v380_v17 = vpack.c.bf16 %v343_v12, %v342_v11  ;;  %v2058_v23 = vpack.c.bf16 %v363_v19, %v362_v14 }
  0xe5   :  { %v199_v18 = vpop.f32.mrb[4].mxu0  ;;  %v279_v26 = vpop.f32.mrb[4].mxu1 }
  0xe6   :  { %v200_v20 = vadd.f32 %v2048_v1, %v199_v18  ;;  %v1563_v21 = vpop.f32.mrb[5].mxu0  ;;  %1642 = vmatmul.mubr.msk.bf16.vlgmr.msra.gmra.mrb[36].mxu1 %vm436_vm2, %v380_v17  ;;  %v280_v27 = vadd.f32 %v2048_v1, %v279_v26  ;;  %v1603_v28 = vpop.f32.mrb[5].mxu1 }
  0xe7   :  { %v202_v22 = vpop.f32.mrb[6].mxu0  ;;  %1645 = vmatprep.mubr.msk.bf16.mxu1 %vm1812_vm0, %v1811_v0  ;;  %v282_v31 = vpop.f32.mrb[6].mxu1 }
  0xe8   :  { %v203_v24 = vadd.f32 %v2048_v1, %v202_v22  ;;  %v1564_v25 = vpop.f32.mrb[7].mxu0  ;;  %v344_v29 = vmax.f32 %v200_v20, 0.0  ;;  %v364_v32 = vmax.f32 %v280_v27, 0.0  ;;  %v283_v33 = vadd.f32 %v2048_v1, %v282_v31  ;;  %v1604_v34 = vpop.f32.mrb[7].mxu1 }
  0xea   :  { %v345_v30 = vmax.f32 %v203_v24, 0.0  ;;  %v365_v37 = vmax.f32 %v283_v33, 0.0 }
  0xec   :  { %v381_v35 = vpack.c.bf16 %v345_v30, %v344_v29  ;;  %v2067_v41 = vpack.c.bf16 %v365_v37, %v364_v32 }
  0xed   :  { %v207_v36 = vpop.f32.mrb[8].mxu0  ;;  %v287_v45 = vpop.f32.mrb[8].mxu1 }
  0xee   :  { %v208_v38 = vadd.f32 %v2048_v1, %v207_v36  ;;  %v1567_v39 = vpop.f32.mrb[9].mxu0  ;;  %1646 = vmatmul.mubr.msk.bf16.gmra.mrb[40].mxu1 %vm436_vm2, %v381_v35  ;;  %v288_v46 = vadd.f32 %v2048_v1, %v287_v45  ;;  %v1607_v47 = vpop.f32.mrb[9].mxu1 }
  0xef   :  { %v210_v40 = vpop.f32.mrb[10].mxu0  ;;  %1649 = vmatprep.mubr.msk.bf16.mxu1 %vm1812_vm0, %v1811_v0  ;;  %v290_v50 = vpop.f32.mrb[10].mxu1 }
  0xf0   :  { %v211_v43 = vadd.f32 %v2048_v1, %v210_v40  ;;  %v1568_v44 = vpop.f32.mrb[11].mxu0  ;;  %v346_v48 = vmax.f32 %v208_v38, 0.0  ;;  %v366_v51 = vmax.f32 %v288_v46, 0.0  ;;  %v291_v52 = vadd.f32 %v2048_v1, %v290_v50  ;;  %v1608_v53 = vpop.f32.mrb[11].mxu1 }
  0xf2   :  { %v347_v49 = vmax.f32 %v211_v43, 0.0  ;;  %v367_v56 = vmax.f32 %v291_v52, 0.0 }
  0xf4   :  { %v382_v54 = vpack.c.bf16 %v347_v49, %v346_v48  ;;  %v2083_v61 = vpack.c.bf16 %v367_v56, %v366_v51 }
  0xf5   :  { %v215_v55 = vpop.f32.mrb[12].mxu0  ;;  %v295_v2 = vpop.f32.mrb[12].mxu1 }
  0xf6   :  { %v216_v57 = vadd.f32 %v2048_v1, %v215_v55  ;;  %v1571_v58 = vpop.f32.mrb[13].mxu0  ;;  %1650 = vmatmul.mubr.msk.bf16.gmra.mrb[44].mxu1 %vm436_vm2, %v382_v54  ;;  %v296_v3 = vadd.f32 %v2048_v1, %v295_v2  ;;  %v1611_v4 = vpop.f32.mrb[13].mxu1 }
  0xf7   :  { %v218_v60 = vpop.f32.mrb[14].mxu0  ;;  %1653 = vmatprep.mubr.msk.bf16.mxu1 %vm1812_vm0, %v1811_v0  ;;  %v298_v7 = vpop.f32.mrb[14].mxu1 }
  0xf8   :  { %v219_v62 = vadd.f32 %v2048_v1, %v218_v60  ;;  %v1572_v63 = vpop.f32.mrb[15].mxu0  ;;  %v348_v5 = vmax.f32 %v216_v57, 0.0  ;;  %v368_v8 = vmax.f32 %v296_v3, 0.0  ;;  %v299_v9 = vadd.f32 %v2048_v1, %v298_v7  ;;  %v1612_v10 = vpop.f32.mrb[15].mxu1 }
  0xfa   :  { %v349_v6 = vmax.f32 %v219_v62, 0.0  ;;  %v369_v13 = vmax.f32 %v299_v9, 0.0 }
  0xfc   :  { %v383_v11 = vpack.c.bf16 %v349_v6, %v348_v5  ;;  %v2092_v17 = vpack.c.bf16 %v369_v13, %v368_v8 }
  0xfd   :  { %v223_v12 = vpop.f32.mrb[16].mxu0  ;;  %v303_v20 = vpop.f32.mrb[16].mxu1 }
  0xfe   :  { %v224_v14 = vadd.f32 %v2048_v1, %v223_v12  ;;  %v1575_v15 = vpop.f32.mrb[17].mxu0  ;;  %1654 = vmatmul.mubr.msk.bf16.gmra.mrb[48].mxu1 %vm436_vm2, %v383_v11  ;;  %v304_v21 = vadd.f32 %v2048_v1, %v303_v20  ;;  %v1615_v22 = vpop.f32.mrb[17].mxu1 }
  0xff   :  { %v226_v16 = vpop.f32.mrb[18].mxu0  ;;  %1657 = vmatprep.mubr.msk.bf16.mxu1 %vm1812_vm0, %v1811_v0  ;;  %v306_v26 = vpop.f32.mrb[18].mxu1 }
 0x100   :  { %v227_v18 = vadd.f32 %v2048_v1, %v226_v16  ;;  %v1576_v19 = vpop.f32.mrb[19].mxu0  ;;  %v350_v24 = vmax.f32 %v224_v14, 0.0  ;;  %v370_v27 = vmax.f32 %v304_v21, 0.0  ;;  %v307_v28 = vadd.f32 %v2048_v1, %v306_v26  ;;  %v1616_v29 = vpop.f32.mrb[19].mxu1 }
 0x102   :  { %v351_v25 = vmax.f32 %v227_v18, 0.0  ;;  %v371_v32 = vmax.f32 %v307_v28, 0.0 }
 0x104   :  { %v384_v30 = vpack.c.bf16 %v351_v25, %v350_v24  ;;  %v2101_v36 = vpack.c.bf16 %v371_v32, %v370_v27 }
 0x105   :  { %v231_v31 = vpop.f32.mrb[20].mxu0  ;;  %v311_v39 = vpop.f32.mrb[20].mxu1 }
 0x106   :  { %v232_v33 = vadd.f32 %v2048_v1, %v231_v31  ;;  %v1579_v34 = vpop.f32.mrb[21].mxu0  ;;  %1658 = vmatmul.mubr.msk.bf16.gmra.mrb[52].mxu1 %vm436_vm2, %v384_v30  ;;  %v312_v40 = vadd.f32 %v2048_v1, %v311_v39  ;;  %v1619_v42 = vpop.f32.mrb[21].mxu1 }
 0x107   :  { %v234_v35 = vpop.f32.mrb[22].mxu0  ;;  %1661 = vmatprep.mubr.msk.bf16.mxu1 %vm1812_vm0, %v1811_v0  ;;  %v314_v45 = vpop.f32.mrb[22].mxu1 }
 0x108   :  { %v235_v37 = vadd.f32 %v2048_v1, %v234_v35  ;;  %v1580_v38 = vpop.f32.mrb[23].mxu0  ;;  %v352_v43 = vmax.f32 %v232_v33, 0.0  ;;  %v372_v46 = vmax.f32 %v312_v40, 0.0  ;;  %v315_v47 = vadd.f32 %v2048_v1, %v314_v45  ;;  %v1620_v48 = vpop.f32.mrb[23].mxu1 }
 0x10a   :  { %v353_v44 = vmax.f32 %v235_v37, 0.0  ;;  %v373_v51 = vmax.f32 %v315_v47, 0.0 }
 0x10c   :  { %v385_v49 = vpack.c.bf16 %v353_v44, %v352_v43  ;;  %v2110_v55 = vpack.c.bf16 %v373_v51, %v372_v46 }
 0x10d   :  { %v239_v50 = vpop.f32.mrb[24].mxu0  ;;  %v319_v58 = vpop.f32.mrb[24].mxu1 }
 0x10e   :  { %v240_v52 = vadd.f32 %v2048_v1, %v239_v50  ;;  %v1583_v53 = vpop.f32.mrb[25].mxu0  ;;  %1662 = vmatmul.mubr.msk.bf16.gmra.mrb[56].mxu1 %vm436_vm2, %v385_v49  ;;  %v320_v59 = vadd.f32 %v2048_v1, %v319_v58  ;;  %v1623_v60 = vpop.f32.mrb[25].mxu1 }
 0x10f   :  { %v242_v54 = vpop.f32.mrb[26].mxu0  ;;  %1665 = vmatprep.mubr.msk.bf16.mxu1 %vm1812_vm0, %v1811_v0  ;;  %v322_v2 = vpop.f32.mrb[26].mxu1 }
 0x110   :  { %v243_v56 = vadd.f32 %v2048_v1, %v242_v54  ;;  %v1584_v57 = vpop.f32.mrb[27].mxu0  ;;  %v354_v62 = vmax.f32 %v240_v52, 0.0  ;;  %v374_v3 = vmax.f32 %v320_v59, 0.0  ;;  %v323_v4 = vadd.f32 %v2048_v1, %v322_v2  ;;  %v1624_v5 = vpop.f32.mrb[27].mxu1 }
 0x112   :  { %v355_v63 = vmax.f32 %v243_v56, 0.0  ;;  %v375_v8 = vmax.f32 %v323_v4, 0.0 }
 0x114   :  { %v386_v6 = vpack.c.bf16 %v355_v63, %v354_v62  ;;  %v396_v12 = vpack.c.bf16 %v375_v8, %v374_v3 }
 0x115   :  { %v247_v7 = vpop.f32.mrb[28].mxu0  ;;  %v327_v15 = vpop.f32.mrb[28].mxu1 }
 0x116   :  { %v248_v9 = vadd.f32 %v2048_v1, %v247_v7  ;;  %v1587_v10 = vpop.f32.mrb[29].mxu0  ;;  %1666 = vmatmul.mubr.msk.bf16.gmra.mrb[60].mxu1 %vm436_vm2, %v386_v6  ;;  %v328_v16 = vadd.f32 %v2048_v1, %v327_v15  ;;  %v1627_v18 = vpop.f32.mrb[29].mxu1 }
 0x117   :  { %v250_v11 = vpop.f32.mrb[30].mxu0  ;;  %1669 = vmatprep.mubr.msk.bf16.mxu1 %vm1812_vm0, %v1811_v0  ;;  %v330_v21 = vpop.f32.mrb[30].mxu1 }
 0x118   :  { %v251_v13 = vadd.f32 %v2048_v1, %v250_v11  ;;  %v1588_v14 = vpop.f32.mrb[31].mxu0  ;;  %v356_v19 = vmax.f32 %v248_v9, 0.0  ;;  %v376_v22 = vmax.f32 %v328_v16, 0.0  ;;  %v331_v24 = vadd.f32 %v2048_v1, %v330_v21  ;;  %v1628_v25 = vpop.f32.mrb[31].mxu1 }
 0x11a   :  { %v357_v20 = vmax.f32 %v251_v13, 0.0  ;;  %v377_v28 = vmax.f32 %v331_v24, 0.0 }
 0x11c   :  { %v387_v26 = vpack.c.bf16 %v357_v20, %v356_v19  ;;  %v397_v32 = vpack.c.bf16 %v377_v28, %v376_v22 }
 0x11d   :  { %v255_v27 = vpop.f32.mrb[32].mxu0  ;;  %v335_v35 = vpop.f32.mrb[32].mxu1 }
 0x11e   :  { %v256_v29 = vadd.f32 %v2048_v1, %v255_v27  ;;  %v1591_v30 = vpop.f32.mrb[33].mxu0  ;;  %1670 = vmatmul.mubr.msk.bf16.gmra.mrb[64].mxu1 %vm436_vm2, %v387_v26  ;;  %v336_v37 = vadd.f32 %v2048_v1, %v335_v35  ;;  %v1631_v38 = vpop.f32.mrb[33].mxu1 }
 0x11f   :  { %v258_v31 = vpop.f32.mrb[34].mxu0  ;;  %1673 = vmatprep.mubr.msk.bf16.mxu1 %vm1812_vm0, %v1811_v0  ;;  %v338_v42 = vpop.f32.mrb[34].mxu1 }
 0x120   :  { %v259_v33 = vadd.f32 %v2048_v1, %v258_v31  ;;  %v1592_v34 = vpop.f32.mrb[35].mxu0  ;;  %v358_v39 = vmax.f32 %v256_v29, 0.0  ;;  %v378_v43 = vmax.f32 %v336_v37, 0.0  ;;  %v339_v44 = vadd.f32 %v2048_v1, %v338_v42  ;;  %v1632_v45 = vpop.f32.mrb[35].mxu1 }
 0x122   :  { %v359_v40 = vmax.f32 %v259_v33, 0.0  ;;  %v379_v48 = vmax.f32 %v339_v44, 0.0 }
 0x124   :  { %v388_v46 = vpack.c.bf16 %v359_v40, %v358_v39  ;;  %v398_v52 = vpack.c.bf16 %v379_v48, %v378_v43 }
 0x125   :  { %v263_v47 = vpop.f32.mrb[36].mxu0 }
 0x126   :  { %v264_v49 = vadd.f32 %v2048_v1, %v263_v47  ;;  %v1595_v50 = vpop.f32.mrb[37].mxu0  ;;  %1674 = vmatmul.mubr.msk.bf16.gmra.mrb[68].mxu1 %vm436_vm2, %v388_v46 }
 0x127   :  { %v266_v51 = vpop.f32.mrb[38].mxu0  ;;  %1677 = vmatprep.mubr.msk.bf16.mxu1 %vm1812_vm0, %v1811_v0 }
 0x128   :  { %v267_v53 = vadd.f32 %v2048_v1, %v266_v51  ;;  %v1596_v54 = vpop.f32.mrb[39].mxu0  ;;  %v360_v56 = vmax.f32 %v264_v49, 0.0  ;;  %v2171_v1 = vld [vmem:[%s2369_s4 + $0x1] ss:$0 sm:$0xff] }
 0x12a   :  { %v361_v57 = vmax.f32 %v267_v53, 0.0 }
 0x12c   :  { %v389_v58 = vpack.c.bf16 %v361_v57, %v360_v56 }
 0x12e   :  { %1678 = vmatmul.mubr.msk.bf16.gmra.mrb[72].mxu1 %vm436_vm2, %v389_v58 }
 0x12f   :  { %1681 = vmatprep.mubr.msk.bf16.mxu1 %vm1812_vm0, %v1811_v0 }
 0x136   :  { %1682 = vmatmul.mubr.msk.bf16.gmra.mrb[76].mxu1 %vm436_vm2, %v2058_v23 }
 0x137   :  { %1685 = vmatprep.mubr.msk.bf16.mxu1 %vm1812_vm0, %v1811_v0 }
 0x13e   :  { %1686 = vmatmul.mubr.msk.bf16.gmra.mrb[80].mxu1 %vm436_vm2, %v2067_v41 }
 0x13f   :  { %1689 = vmatprep.mubr.msk.bf16.mxu1 %vm1812_vm0, %v1811_v0 }
 0x146   :  { %1690 = vmatmul.mubr.msk.bf16.gmra.mrb[84].mxu1 %vm436_vm2, %v2083_v61 }
 0x147   :  { %1693 = vmatprep.mubr.msk.bf16.mxu1 %vm1812_vm0, %v1811_v0 }
 0x14e   :  { %1694 = vmatmul.mubr.msk.bf16.gmra.mrb[88].mxu1 %vm436_vm2, %v2092_v17 }
 0x14f   :  { %1697 = vmatprep.mubr.msk.bf16.mxu1 %vm1812_vm0, %v1811_v0 }
 0x156   :  { %1698 = vmatmul.mubr.msk.bf16.gmra.mrb[92].mxu1 %vm436_vm2, %v2101_v36 }
 0x157   :  { %1701 = vmatprep.mubr.msk.bf16.mxu1 %vm1812_vm0, %v1811_v0 }
 0x15e   :  { %1702 = vmatmul.mubr.msk.bf16.gmra.mrb[96].mxu1 %vm436_vm2, %v2110_v55 }
 0x15f   :  { %1705 = vmatprep.mubr.msk.bf16.mxu1 %vm1812_vm0, %v1811_v0 }
 0x166   :  { %1706 = vmatmul.mubr.msk.bf16.gmra.mrb[100].mxu1 %vm436_vm2, %v396_v12 }
 0x167   :  { %1709 = vmatprep.mubr.msk.bf16.mxu1 %vm1812_vm0, %v1811_v0 }
 0x16e   :  { %1710 = vmatmul.mubr.msk.bf16.gmra.mrb[104].mxu1 %vm436_vm2, %v397_v32 }
 0x16f   :  { %1713 = vmatprep.mubr.msk.bf16.mxu1 %vm1812_vm0, %v1811_v0 }
 0x176   :  { %1714 = vmatmul.mubr.msk.bf16.gmra.mrb[108].mxu1 %vm436_vm2, %v398_v52 }
 0x1b9   :  { %v528_v23 = vpop.f32.mrb[36].mxu1 }
 0x1ba   :  { %v529_v41 = vadd.f32 %v2171_v1, %v528_v23  ;;  %v1643_v61 = vpop.f32.mrb[37].mxu1 }
 0x1bb   :  { %v531_v17 = vpop.f32.mrb[38].mxu1 }
 0x1bc   :  { %v532_v36 = vadd.f32 %v2171_v1, %v531_v17  ;;  %v1644_v55 = vpop.f32.mrb[39].mxu1  ;;  %v679_v59 = vmax.f32 %v529_v41, 0.0 }
 0x1be   :  { %v680_v60 = vmax.f32 %v532_v36, 0.0 }
 0x1c0   :  { %v717_v62 = vpack.c.bf16 %v680_v60, %v679_v59 }
 0x1c1   :  { %v536_v63 = vpop.f32.mrb[40].mxu1 }
 0x1c2   :  { %v537_v2 = vadd.f32 %v2171_v1, %v536_v63  ;;  %v1647_v3 = vpop.f32.mrb[41].mxu1  ;;  %1722 = vmatmul.mubr.msk.bf16.vlgmr.msra.gmra.mrb[40].mxu0 %vm99_vm1, %v717_v62 }
 0x1c3   :  { %v539_v4 = vpop.f32.mrb[42].mxu1  ;;  %1725 = vmatprep.mubr.msk.bf16.mxu0 %vm1812_vm0, %v1811_v0 }
 0x1c4   :  { %v540_v5 = vadd.f32 %v2171_v1, %v539_v4  ;;  %v1648_v6 = vpop.f32.mrb[43].mxu1  ;;  %v681_v7 = vmax.f32 %v537_v2, 0.0 }
 0x1c6   :  { %v682_v8 = vmax.f32 %v540_v5, 0.0 }
 0x1c8   :  { %v718_v9 = vpack.c.bf16 %v682_v8, %v681_v7 }
 0x1c9   :  { %v544_v10 = vpop.f32.mrb[44].mxu1 }
 0x1ca   :  { %v545_v11 = vadd.f32 %v2171_v1, %v544_v10  ;;  %v1651_v12 = vpop.f32.mrb[45].mxu1  ;;  %1726 = vmatmul.mubr.msk.bf16.gmra.mrb[44].mxu0 %vm99_vm1, %v718_v9 }
 0x1cb   :  { %v547_v13 = vpop.f32.mrb[46].mxu1  ;;  %1729 = vmatprep.mubr.msk.bf16.mxu0 %vm1812_vm0, %v1811_v0 }
 0x1cc   :  { %v548_v14 = vadd.f32 %v2171_v1, %v547_v13  ;;  %v1652_v15 = vpop.f32.mrb[47].mxu1  ;;  %v683_v16 = vmax.f32 %v545_v11, 0.0 }
 0x1ce   :  { %v684_v18 = vmax.f32 %v548_v14, 0.0 }
 0x1d0   :  { %v719_v19 = vpack.c.bf16 %v684_v18, %v683_v16 }
 0x1d1   :  { %v552_v20 = vpop.f32.mrb[48].mxu1 }
 0x1d2   :  { %v553_v21 = vadd.f32 %v2171_v1, %v552_v20  ;;  %v1655_v22 = vpop.f32.mrb[49].mxu1  ;;  %1730 = vmatmul.mubr.msk.bf16.gmra.mrb[48].mxu0 %vm99_vm1, %v719_v19 }
 0x1d3   :  { %v555_v24 = vpop.f32.mrb[50].mxu1  ;;  %1733 = vmatprep.mubr.msk.bf16.mxu0 %vm1812_vm0, %v1811_v0 }
 0x1d4   :  { %v556_v25 = vadd.f32 %v2171_v1, %v555_v24  ;;  %v1656_v26 = vpop.f32.mrb[51].mxu1  ;;  %v685_v27 = vmax.f32 %v553_v21, 0.0 }
 0x1d6   :  { %v686_v28 = vmax.f32 %v556_v25, 0.0 }
 0x1d8   :  { %v720_v29 = vpack.c.bf16 %v686_v28, %v685_v27 }
 0x1d9   :  { %v560_v30 = vpop.f32.mrb[52].mxu1 }
 0x1da   :  { %v561_v31 = vadd.f32 %v2171_v1, %v560_v30  ;;  %v1659_v32 = vpop.f32.mrb[53].mxu1  ;;  %1734 = vmatmul.mubr.msk.bf16.gmra.mrb[52].mxu0 %vm99_vm1, %v720_v29 }
 0x1db   :  { %v563_v33 = vpop.f32.mrb[54].mxu1  ;;  %1737 = vmatprep.mubr.msk.bf16.mxu0 %vm1812_vm0, %v1811_v0 }
 0x1dc   :  { %v564_v34 = vadd.f32 %v2171_v1, %v563_v33  ;;  %v1660_v35 = vpop.f32.mrb[55].mxu1  ;;  %v687_v37 = vmax.f32 %v561_v31, 0.0 }
 0x1de   :  { %v688_v38 = vmax.f32 %v564_v34, 0.0 }
 0x1e0   :  { %v721_v39 = vpack.c.bf16 %v688_v38, %v687_v37 }
 0x1e1   :  { %v568_v40 = vpop.f32.mrb[56].mxu1 }
 0x1e2   :  { %v569_v42 = vadd.f32 %v2171_v1, %v568_v40  ;;  %v1663_v43 = vpop.f32.mrb[57].mxu1  ;;  %1738 = vmatmul.mubr.msk.bf16.gmra.mrb[56].mxu0 %vm99_vm1, %v721_v39 }
 0x1e3   :  { %v571_v44 = vpop.f32.mrb[58].mxu1  ;;  %1741 = vmatprep.mubr.msk.bf16.mxu0 %vm1812_vm0, %v1811_v0 }
 0x1e4   :  { %v572_v45 = vadd.f32 %v2171_v1, %v571_v44  ;;  %v1664_v46 = vpop.f32.mrb[59].mxu1  ;;  %v689_v47 = vmax.f32 %v569_v42, 0.0 }
 0x1e6   :  { %v690_v48 = vmax.f32 %v572_v45, 0.0 }
 0x1e8   :  { %v722_v49 = vpack.c.bf16 %v690_v48, %v689_v47 }
 0x1e9   :  { %v576_v50 = vpop.f32.mrb[60].mxu1 }
 0x1ea   :  { %v577_v51 = vadd.f32 %v2171_v1, %v576_v50  ;;  %v1667_v52 = vpop.f32.mrb[61].mxu1  ;;  %1742 = vmatmul.mubr.msk.bf16.gmra.mrb[60].mxu0 %vm99_vm1, %v722_v49 }
 0x1eb   :  { %v579_v53 = vpop.f32.mrb[62].mxu1  ;;  %1745 = vmatprep.mubr.msk.bf16.mxu0 %vm1812_vm0, %v1811_v0 }
 0x1ec   :  { %v580_v54 = vadd.f32 %v2171_v1, %v579_v53  ;;  %v1668_v56 = vpop.f32.mrb[63].mxu1  ;;  %v691_v57 = vmax.f32 %v577_v51, 0.0 }
 0x1ee   :  { %v692_v58 = vmax.f32 %v580_v54, 0.0 }
 0x1f0   :  { %v723_v23 = vpack.c.bf16 %v692_v58, %v691_v57 }
 0x1f1   :  { %v584_v41 = vpop.f32.mrb[64].mxu1 }
 0x1f2   :  { %v585_v61 = vadd.f32 %v2171_v1, %v584_v41  ;;  %v1671_v17 = vpop.f32.mrb[65].mxu1  ;;  %1746 = vmatmul.mubr.msk.bf16.gmra.mrb[64].mxu0 %vm99_vm1, %v723_v23 }
 0x1f3   :  { %v587_v36 = vpop.f32.mrb[66].mxu1  ;;  %1749 = vmatprep.mubr.msk.bf16.mxu0 %vm1812_vm0, %v1811_v0 }
 0x1f4   :  { %v588_v55 = vadd.f32 %v2171_v1, %v587_v36  ;;  %v1672_v59 = vpop.f32.mrb[67].mxu1  ;;  %v693_v60 = vmax.f32 %v585_v61, 0.0 }
 0x1f6   :  { %v694_v62 = vmax.f32 %v588_v55, 0.0 }
 0x1f8   :  { %v724_v63 = vpack.c.bf16 %v694_v62, %v693_v60 }
 0x1f9   :  { %v592_v2 = vpop.f32.mrb[68].mxu1 }
 0x1fa   :  { %v593_v3 = vadd.f32 %v2171_v1, %v592_v2  ;;  %v1675_v4 = vpop.f32.mrb[69].mxu1  ;;  %1750 = vmatmul.mubr.msk.bf16.gmra.mrb[68].mxu0 %vm99_vm1, %v724_v63 }
 0x1fb   :  { %v595_v5 = vpop.f32.mrb[70].mxu1  ;;  %1753 = vmatprep.mubr.msk.bf16.mxu0 %vm1812_vm0, %v1811_v0 }
 0x1fc   :  { %v596_v6 = vadd.f32 %v2171_v1, %v595_v5  ;;  %v1676_v7 = vpop.f32.mrb[71].mxu1  ;;  %v695_v8 = vmax.f32 %v593_v3, 0.0 }
 0x1fe   :  { %v696_v9 = vmax.f32 %v596_v6, 0.0 }
 0x200   :  { %v725_v10 = vpack.c.bf16 %v696_v9, %v695_v8 }
 0x201   :  { %v600_v11 = vpop.f32.mrb[72].mxu1 }
 0x202   :  { %v601_v12 = vadd.f32 %v2171_v1, %v600_v11  ;;  %v1679_v13 = vpop.f32.mrb[73].mxu1  ;;  %1754 = vmatmul.mubr.msk.bf16.gmra.mrb[72].mxu0 %vm99_vm1, %v725_v10 }
 0x203   :  { %v603_v14 = vpop.f32.mrb[74].mxu1  ;;  %1757 = vmatprep.mubr.msk.bf16.mxu0 %vm1812_vm0, %v1811_v0 }
 0x204   :  { %v604_v15 = vadd.f32 %v2171_v1, %v603_v14  ;;  %v1680_v16 = vpop.f32.mrb[75].mxu1  ;;  %v697_v18 = vmax.f32 %v601_v12, 0.0 }
 0x206   :  { %v698_v19 = vmax.f32 %v604_v15, 0.0 }
 0x208   :  { %v726_v20 = vpack.c.bf16 %v698_v19, %v697_v18 }
 0x209   :  { %v608_v21 = vpop.f32.mrb[76].mxu1 }
 0x20a   :  { %v609_v22 = vadd.f32 %v2171_v1, %v608_v21  ;;  %v1683_v24 = vpop.f32.mrb[77].mxu1  ;;  %1758 = vmatmul.mubr.msk.bf16.gmra.mrb[76].mxu0 %vm99_vm1, %v726_v20 }
 0x20b   :  { %v611_v25 = vpop.f32.mrb[78].mxu1  ;;  %1761 = vmatprep.mubr.msk.bf16.mxu0 %vm1812_vm0, %v1811_v0 }
 0x20c   :  { %v612_v26 = vadd.f32 %v2171_v1, %v611_v25  ;;  %v1684_v27 = vpop.f32.mrb[79].mxu1  ;;  %v699_v28 = vmax.f32 %v609_v22, 0.0 }
 0x20e   :  { %v700_v29 = vmax.f32 %v612_v26, 0.0 }
 0x210   :  { %v727_v30 = vpack.c.bf16 %v700_v29, %v699_v28 }
 0x211   :  { %v616_v31 = vpop.f32.mrb[80].mxu1 }
 0x212   :  { %v617_v32 = vadd.f32 %v2171_v1, %v616_v31  ;;  %v1687_v33 = vpop.f32.mrb[81].mxu1  ;;  %1762 = vmatmul.mubr.msk.bf16.gmra.mrb[80].mxu0 %vm99_vm1, %v727_v30 }
 0x213   :  { %v619_v34 = vpop.f32.mrb[82].mxu1  ;;  %1765 = vmatprep.mubr.msk.bf16.mxu0 %vm1812_vm0, %v1811_v0 }
 0x214   :  { %v620_v35 = vadd.f32 %v2171_v1, %v619_v34  ;;  %v1688_v37 = vpop.f32.mrb[83].mxu1  ;;  %v701_v38 = vmax.f32 %v617_v32, 0.0 }
 0x216   :  { %v702_v39 = vmax.f32 %v620_v35, 0.0 }
 0x218   :  { %v728_v40 = vpack.c.bf16 %v702_v39, %v701_v38 }
 0x219   :  { %v624_v42 = vpop.f32.mrb[84].mxu1 }
 0x21a   :  { %v625_v43 = vadd.f32 %v2171_v1, %v624_v42  ;;  %v1691_v44 = vpop.f32.mrb[85].mxu1  ;;  %1766 = vmatmul.mubr.msk.bf16.gmra.mrb[84].mxu0 %vm99_vm1, %v728_v40 }
 0x21b   :  { %v627_v45 = vpop.f32.mrb[86].mxu1  ;;  %1769 = vmatprep.mubr.msk.bf16.mxu0 %vm1812_vm0, %v1811_v0 }
 0x21c   :  { %v628_v46 = vadd.f32 %v2171_v1, %v627_v45  ;;  %v1692_v47 = vpop.f32.mrb[87].mxu1  ;;  %v703_v48 = vmax.f32 %v625_v43, 0.0  ;;  %v2269_v43 = vld [vmem:[%s2369_s4 + $0x2] ss:$0 sm:$0xff] }
 0x21e   :  { %v704_v49 = vmax.f32 %v628_v46, 0.0 }
 0x220   :  { %v729_v50 = vpack.c.bf16 %v704_v49, %v703_v48 }
 0x221   :  { %v632_v51 = vpop.f32.mrb[88].mxu1 }
 0x222   :  { %v633_v52 = vadd.f32 %v2171_v1, %v632_v51  ;;  %v1695_v53 = vpop.f32.mrb[89].mxu1  ;;  %1770 = vmatmul.mubr.msk.bf16.gmra.mrb[88].mxu0 %vm99_vm1, %v729_v50 }
 0x223   :  { %v635_v54 = vpop.f32.mrb[90].mxu1  ;;  %1773 = vmatprep.mubr.msk.bf16.mxu0 %vm1812_vm0, %v1811_v0 }
 0x224   :  { %v636_v56 = vadd.f32 %v2171_v1, %v635_v54  ;;  %v1696_v57 = vpop.f32.mrb[91].mxu1  ;;  %v705_v58 = vmax.f32 %v633_v52, 0.0 }
 0x226   :  { %v706_v23 = vmax.f32 %v636_v56, 0.0 }
 0x228   :  { %v730_v41 = vpack.c.bf16 %v706_v23, %v705_v58 }
 0x229   :  { %v640_v61 = vpop.f32.mrb[92].mxu1 }
 0x22a   :  { %v641_v17 = vadd.f32 %v2171_v1, %v640_v61  ;;  %v1699_v36 = vpop.f32.mrb[93].mxu1  ;;  %1774 = vmatmul.mubr.msk.bf16.gmra.mrb[92].mxu0 %vm99_vm1, %v730_v41 }
 0x22b   :  { %v643_v55 = vpop.f32.mrb[94].mxu1  ;;  %1777 = vmatprep.mubr.msk.bf16.mxu0 %vm1812_vm0, %v1811_v0 }
 0x22c   :  { %v644_v59 = vadd.f32 %v2171_v1, %v643_v55  ;;  %v1700_v60 = vpop.f32.mrb[95].mxu1  ;;  %v707_v62 = vmax.f32 %v641_v17, 0.0 }
 0x22e   :  { %v708_v63 = vmax.f32 %v644_v59, 0.0 }
 0x230   :  { %v731_v2 = vpack.c.bf16 %v708_v63, %v707_v62 }
 0x231   :  { %v648_v3 = vpop.f32.mrb[96].mxu1 }
 0x232   :  { %v649_v4 = vadd.f32 %v2171_v1, %v648_v3  ;;  %v1703_v5 = vpop.f32.mrb[97].mxu1  ;;  %1778 = vmatmul.mubr.msk.bf16.gmra.mrb[96].mxu0 %vm99_vm1, %v731_v2 }
 0x233   :  { %v651_v6 = vpop.f32.mrb[98].mxu1  ;;  %1781 = vmatprep.mubr.msk.bf16.mxu0 %vm1812_vm0, %v1811_v0 }
 0x234   :  { %v652_v7 = vadd.f32 %v2171_v1, %v651_v6  ;;  %v1704_v8 = vpop.f32.mrb[99].mxu1  ;;  %v709_v9 = vmax.f32 %v649_v4, 0.0 }
 0x236   :  { %v710_v10 = vmax.f32 %v652_v7, 0.0 }
 0x238   :  { %v732_v11 = vpack.c.bf16 %v710_v10, %v709_v9 }
 0x239   :  { %v656_v12 = vpop.f32.mrb[100].mxu1 }
 0x23a   :  { %v657_v13 = vadd.f32 %v2171_v1, %v656_v12  ;;  %v1707_v14 = vpop.f32.mrb[101].mxu1  ;;  %1782 = vmatmul.mubr.msk.bf16.gmra.mrb[100].mxu0 %vm99_vm1, %v732_v11 }
 0x23b   :  { %v659_v15 = vpop.f32.mrb[102].mxu1  ;;  %1785 = vmatprep.mubr.msk.bf16.mxu0 %vm1812_vm0, %v1811_v0 }
 0x23c   :  { %v660_v16 = vadd.f32 %v2171_v1, %v659_v15  ;;  %v1708_v18 = vpop.f32.mrb[103].mxu1  ;;  %v711_v19 = vmax.f32 %v657_v13, 0.0 }
 0x23e   :  { %v712_v20 = vmax.f32 %v660_v16, 0.0 }
 0x240   :  { %v733_v21 = vpack.c.bf16 %v712_v20, %v711_v19 }
 0x241   :  { %v664_v22 = vpop.f32.mrb[104].mxu1 }
 0x242   :  { %v665_v24 = vadd.f32 %v2171_v1, %v664_v22  ;;  %v1711_v25 = vpop.f32.mrb[105].mxu1  ;;  %1786 = vmatmul.mubr.msk.bf16.gmra.mrb[104].mxu0 %vm99_vm1, %v733_v21 }
 0x243   :  { %v667_v26 = vpop.f32.mrb[106].mxu1  ;;  %1789 = vmatprep.mubr.msk.bf16.mxu0 %vm1812_vm0, %v1811_v0 }
 0x244   :  { %v668_v27 = vadd.f32 %v2171_v1, %v667_v26  ;;  %v1712_v28 = vpop.f32.mrb[107].mxu1  ;;  %v713_v29 = vmax.f32 %v665_v24, 0.0 }
 0x246   :  { %v714_v30 = vmax.f32 %v668_v27, 0.0 }
 0x248   :  { %v734_v31 = vpack.c.bf16 %v714_v30, %v713_v29 }
 0x249   :  { %v672_v32 = vpop.f32.mrb[108].mxu1 }
 0x24a   :  { %v673_v33 = vadd.f32 %v2171_v1, %v672_v32  ;;  %v1715_v34 = vpop.f32.mrb[109].mxu1  ;;  %1790 = vmatmul.mubr.msk.bf16.gmra.mrb[108].mxu0 %vm99_vm1, %v734_v31 }
 0x24b   :  { %v675_v35 = vpop.f32.mrb[110].mxu1  ;;  %1793 = vmatprep.mubr.msk.bf16.mxu0 %vm1812_vm0, %v1811_v0 }
 0x24c   :  { %v676_v37 = vadd.f32 %v2171_v1, %v675_v35  ;;  %v1716_v38 = vpop.f32.mrb[111].mxu1  ;;  %v715_v39 = vmax.f32 %v673_v33, 0.0 }
 0x24e   :  { %v716_v40 = vmax.f32 %v676_v37, 0.0 }
 0x250   :  { %v735_v42 = vpack.c.bf16 %v716_v40, %v715_v39 }
 0x252   :  { %1794 = vmatmul.mubr.msk.bf16.gmra.mrb[112].mxu0 %vm99_vm1, %v735_v42 }
 0x295   :  { %v848_v44 = vpop.f32.mrb[40].mxu0 }
 0x296   :  { %v849_v45 = vadd.f32 %v2269_v43, %v848_v44  ;;  %v1723_v46 = vpop.f32.mrb[41].mxu0 }
 0x297   :  { %v851_v47 = vpop.f32.mrb[42].mxu0 }
 0x298   :  { %v852_v0 = vadd.f32 %v2269_v43, %v851_v47  ;;  %v1724_v48 = vpop.f32.mrb[43].mxu0  ;;  %v999_v1 = vmax.f32 %v849_v45, 0.0 }
 0x29a   :  { %v1000_v49 = vmax.f32 %v852_v0, 0.0 }
 0x29c   :  { %v1378_v50 = vpack.c.bf16 %v1000_v49, %v999_v1 }
 0x29d   :  { %v856_v51 = vpop.f32.mrb[44].mxu0 }
 0x29e   :  { %1379 = vst [vmem:[%s2371_s5] sm:$0xff] %v1378_v50   ;;  %v857_v52 = vadd.f32 %v2269_v43, %v856_v51  ;;  %v1727_v53 = vpop.f32.mrb[45].mxu0 }
 0x29f   :  { %v859_v54 = vpop.f32.mrb[46].mxu0 }
 0x2a0   :  { %v860_v56 = vadd.f32 %v2269_v43, %v859_v54  ;;  %v1728_v57 = vpop.f32.mrb[47].mxu0  ;;  %v1001_v58 = vmax.f32 %v857_v52, 0.0 }
 0x2a2   :  { %v1002_v23 = vmax.f32 %v860_v56, 0.0 }
 0x2a4   :  { %v1383_v41 = vpack.c.bf16 %v1002_v23, %v1001_v58 }
 0x2a5   :  { %v864_v61 = vpop.f32.mrb[48].mxu0 }
 0x2a6   :  { %1470 = vst [vmem:[%s2371_s5 + $0x8] sm:$0xff] %v1383_v41   ;;  %v865_v17 = vadd.f32 %v2269_v43, %v864_v61  ;;  %v1731_v36 = vpop.f32.mrb[49].mxu0 }
 0x2a7   :  { %v867_v55 = vpop.f32.mrb[50].mxu0 }
 0x2a8   :  { %v868_v59 = vadd.f32 %v2269_v43, %v867_v55  ;;  %v1732_v60 = vpop.f32.mrb[51].mxu0  ;;  %v1003_v62 = vmax.f32 %v865_v17, 0.0 }
 0x2aa   :  { %v1004_v63 = vmax.f32 %v868_v59, 0.0 }
 0x2ac   :  { %v1388_v2 = vpack.c.bf16 %v1004_v63, %v1003_v62 }
 0x2ad   :  { %v872_v3 = vpop.f32.mrb[52].mxu0 }
 0x2ae   :  { %1471 = vst [vmem:[%s2371_s5 + $0x10] sm:$0xff] %v1388_v2   ;;  %v873_v4 = vadd.f32 %v2269_v43, %v872_v3  ;;  %v1735_v5 = vpop.f32.mrb[53].mxu0 }
 0x2af   :  { %v875_v6 = vpop.f32.mrb[54].mxu0 }
 0x2b0   :  { %v876_v7 = vadd.f32 %v2269_v43, %v875_v6  ;;  %v1736_v8 = vpop.f32.mrb[55].mxu0  ;;  %v1005_v9 = vmax.f32 %v873_v4, 0.0 }
 0x2b2   :  { %v1006_v10 = vmax.f32 %v876_v7, 0.0 }
 0x2b4   :  { %v1393_v11 = vpack.c.bf16 %v1006_v10, %v1005_v9 }
 0x2b5   :  { %v880_v12 = vpop.f32.mrb[56].mxu0 }
 0x2b6   :  { %1472 = vst [vmem:[%s2371_s5 + $0x18] sm:$0xff] %v1393_v11   ;;  %v881_v13 = vadd.f32 %v2269_v43, %v880_v12  ;;  %v1739_v14 = vpop.f32.mrb[57].mxu0 }
 0x2b7   :  { %v883_v15 = vpop.f32.mrb[58].mxu0 }
 0x2b8   :  { %v884_v16 = vadd.f32 %v2269_v43, %v883_v15  ;;  %v1740_v18 = vpop.f32.mrb[59].mxu0  ;;  %v1007_v19 = vmax.f32 %v881_v13, 0.0 }
 0x2ba   :  { %v1008_v20 = vmax.f32 %v884_v16, 0.0 }
 0x2bc   :  { %v1398_v21 = vpack.c.bf16 %v1008_v20, %v1007_v19 }
 0x2bd   :  { %v888_v22 = vpop.f32.mrb[60].mxu0 }
 0x2be   :  { %1473 = vst [vmem:[%s2371_s5 + $0x20] sm:$0xff] %v1398_v21   ;;  %v889_v24 = vadd.f32 %v2269_v43, %v888_v22  ;;  %v1743_v25 = vpop.f32.mrb[61].mxu0 }
 0x2bf   :  { %v891_v26 = vpop.f32.mrb[62].mxu0 }
 0x2c0   :  { %v892_v27 = vadd.f32 %v2269_v43, %v891_v26  ;;  %v1744_v28 = vpop.f32.mrb[63].mxu0  ;;  %v1009_v29 = vmax.f32 %v889_v24, 0.0 }
 0x2c2   :  { %v1010_v30 = vmax.f32 %v892_v27, 0.0 }
 0x2c4   :  { %v1403_v31 = vpack.c.bf16 %v1010_v30, %v1009_v29 }
 0x2c5   :  { %v896_v32 = vpop.f32.mrb[64].mxu0 }
 0x2c6   :  { %1474 = vst [vmem:[%s2371_s5 + $0x28] sm:$0xff] %v1403_v31   ;;  %v897_v33 = vadd.f32 %v2269_v43, %v896_v32  ;;  %v1747_v34 = vpop.f32.mrb[65].mxu0 }
 0x2c7   :  { %v899_v35 = vpop.f32.mrb[66].mxu0 }
 0x2c8   :  { %v900_v37 = vadd.f32 %v2269_v43, %v899_v35  ;;  %v1748_v38 = vpop.f32.mrb[67].mxu0  ;;  %v1011_v39 = vmax.f32 %v897_v33, 0.0 }
 0x2ca   :  { %v1012_v40 = vmax.f32 %v900_v37, 0.0 }
 0x2cc   :  { %v1408_v42 = vpack.c.bf16 %v1012_v40, %v1011_v39 }
 0x2cd   :  { %v904_v44 = vpop.f32.mrb[68].mxu0 }
 0x2ce   :  { %1475 = vst [vmem:[%s2371_s5 + $0x30] sm:$0xff] %v1408_v42   ;;  %v905_v45 = vadd.f32 %v2269_v43, %v904_v44  ;;  %v1751_v46 = vpop.f32.mrb[69].mxu0 }
 0x2cf   :  { %v907_v47 = vpop.f32.mrb[70].mxu0 }
 0x2d0   :  { %v908_v0 = vadd.f32 %v2269_v43, %v907_v47  ;;  %v1752_v48 = vpop.f32.mrb[71].mxu0  ;;  %v1013_v1 = vmax.f32 %v905_v45, 0.0 }
 0x2d2   :  { %v1014_v49 = vmax.f32 %v908_v0, 0.0 }
 0x2d4   :  { %v1413_v50 = vpack.c.bf16 %v1014_v49, %v1013_v1 }
 0x2d5   :  { %v912_v51 = vpop.f32.mrb[72].mxu0 }
 0x2d6   :  { %1476 = vst [vmem:[%s2371_s5 + $0x38] sm:$0xff] %v1413_v50   ;;  %v913_v52 = vadd.f32 %v2269_v43, %v912_v51  ;;  %v1755_v53 = vpop.f32.mrb[73].mxu0 }
 0x2d7   :  { %v915_v54 = vpop.f32.mrb[74].mxu0 }
 0x2d8   :  { %v916_v56 = vadd.f32 %v2269_v43, %v915_v54  ;;  %v1756_v57 = vpop.f32.mrb[75].mxu0  ;;  %v1015_v58 = vmax.f32 %v913_v52, 0.0 }
 0x2da   :  { %v1016_v23 = vmax.f32 %v916_v56, 0.0 }
 0x2dc   :  { %v1418_v41 = vpack.c.bf16 %v1016_v23, %v1015_v58 }
 0x2dd   :  { %v920_v61 = vpop.f32.mrb[76].mxu0 }
 0x2de   :  { %1477 = vst [vmem:[%s2371_s5 + $0x40] sm:$0xff] %v1418_v41   ;;  %v921_v17 = vadd.f32 %v2269_v43, %v920_v61  ;;  %v1759_v36 = vpop.f32.mrb[77].mxu0 }
 0x2df   :  { %v923_v55 = vpop.f32.mrb[78].mxu0 }
 0x2e0   :  { %v924_v59 = vadd.f32 %v2269_v43, %v923_v55  ;;  %v1760_v60 = vpop.f32.mrb[79].mxu0  ;;  %v1017_v62 = vmax.f32 %v921_v17, 0.0 }
 0x2e2   :  { %v1018_v63 = vmax.f32 %v924_v59, 0.0 }
 0x2e4   :  { %v1423_v2 = vpack.c.bf16 %v1018_v63, %v1017_v62 }
 0x2e5   :  { %v928_v3 = vpop.f32.mrb[80].mxu0 }
 0x2e6   :  { %1478 = vst [vmem:[%s2371_s5 + $0x48] sm:$0xff] %v1423_v2   ;;  %v929_v4 = vadd.f32 %v2269_v43, %v928_v3  ;;  %v1763_v5 = vpop.f32.mrb[81].mxu0 }
 0x2e7   :  { %v931_v6 = vpop.f32.mrb[82].mxu0 }
 0x2e8   :  { %v932_v7 = vadd.f32 %v2269_v43, %v931_v6  ;;  %v1764_v8 = vpop.f32.mrb[83].mxu0  ;;  %v1019_v9 = vmax.f32 %v929_v4, 0.0 }
 0x2ea   :  { %v1020_v10 = vmax.f32 %v932_v7, 0.0 }
 0x2ec   :  { %v1428_v11 = vpack.c.bf16 %v1020_v10, %v1019_v9 }
 0x2ed   :  { %v936_v12 = vpop.f32.mrb[84].mxu0 }
 0x2ee   :  { %1479 = vst [vmem:[%s2371_s5 + $0x50] sm:$0xff] %v1428_v11   ;;  %v937_v13 = vadd.f32 %v2269_v43, %v936_v12  ;;  %v1767_v14 = vpop.f32.mrb[85].mxu0 }
 0x2ef   :  { %v939_v15 = vpop.f32.mrb[86].mxu0 }
 0x2f0   :  { %v940_v16 = vadd.f32 %v2269_v43, %v939_v15  ;;  %v1768_v18 = vpop.f32.mrb[87].mxu0  ;;  %v1021_v19 = vmax.f32 %v937_v13, 0.0 }
 0x2f2   :  { %v1022_v20 = vmax.f32 %v940_v16, 0.0 }
 0x2f4   :  { %v1433_v21 = vpack.c.bf16 %v1022_v20, %v1021_v19 }
 0x2f5   :  { %v944_v22 = vpop.f32.mrb[88].mxu0 }
 0x2f6   :  { %1480 = vst [vmem:[%s2371_s5 + $0x58] sm:$0xff] %v1433_v21   ;;  %v945_v24 = vadd.f32 %v2269_v43, %v944_v22  ;;  %v1771_v25 = vpop.f32.mrb[89].mxu0 }
 0x2f7   :  { %v947_v26 = vpop.f32.mrb[90].mxu0 }
 0x2f8   :  { %v948_v27 = vadd.f32 %v2269_v43, %v947_v26  ;;  %v1772_v28 = vpop.f32.mrb[91].mxu0  ;;  %v1023_v29 = vmax.f32 %v945_v24, 0.0 }
 0x2fa   :  { %v1024_v30 = vmax.f32 %v948_v27, 0.0 }
 0x2fc   :  { %v1438_v31 = vpack.c.bf16 %v1024_v30, %v1023_v29 }
 0x2fd   :  { %v952_v32 = vpop.f32.mrb[92].mxu0 }
 0x2fe   :  { %1481 = vst [vmem:[%s2371_s5 + $0x60] sm:$0xff] %v1438_v31   ;;  %v953_v33 = vadd.f32 %v2269_v43, %v952_v32  ;;  %v1775_v34 = vpop.f32.mrb[93].mxu0 }
 0x2ff   :  { %v955_v35 = vpop.f32.mrb[94].mxu0 }
 0x300   :  { %v956_v37 = vadd.f32 %v2269_v43, %v955_v35  ;;  %v1776_v38 = vpop.f32.mrb[95].mxu0  ;;  %v1025_v39 = vmax.f32 %v953_v33, 0.0 }
 0x302   :  { %v1026_v40 = vmax.f32 %v956_v37, 0.0 }
 0x304   :  { %v1443_v42 = vpack.c.bf16 %v1026_v40, %v1025_v39 }
 0x305   :  { %v960_v44 = vpop.f32.mrb[96].mxu0 }
 0x306   :  { %1482 = vst [vmem:[%s2371_s5 + $0x68] sm:$0xff] %v1443_v42   ;;  %v961_v45 = vadd.f32 %v2269_v43, %v960_v44  ;;  %v1779_v46 = vpop.f32.mrb[97].mxu0 }
 0x307   :  { %v963_v47 = vpop.f32.mrb[98].mxu0 }
 0x308   :  { %v964_v0 = vadd.f32 %v2269_v43, %v963_v47  ;;  %v1780_v48 = vpop.f32.mrb[99].mxu0  ;;  %v1027_v1 = vmax.f32 %v961_v45, 0.0 }
 0x30a   :  { %v1028_v49 = vmax.f32 %v964_v0, 0.0 }
 0x30c   :  { %v1448_v50 = vpack.c.bf16 %v1028_v49, %v1027_v1 }
 0x30d   :  { %v968_v51 = vpop.f32.mrb[100].mxu0 }
 0x30e   :  { %1483 = vst [vmem:[%s2371_s5 + $0x70] sm:$0xff] %v1448_v50   ;;  %v969_v52 = vadd.f32 %v2269_v43, %v968_v51  ;;  %v1783_v53 = vpop.f32.mrb[101].mxu0 }
 0x30f   :  { %v971_v54 = vpop.f32.mrb[102].mxu0 }
 0x310   :  { %v972_v56 = vadd.f32 %v2269_v43, %v971_v54  ;;  %v1784_v57 = vpop.f32.mrb[103].mxu0  ;;  %v1029_v58 = vmax.f32 %v969_v52, 0.0 }
 0x312   :  { %v1030_v23 = vmax.f32 %v972_v56, 0.0 }
 0x314   :  { %v1453_v41 = vpack.c.bf16 %v1030_v23, %v1029_v58 }
 0x315   :  { %v976_v61 = vpop.f32.mrb[104].mxu0 }
 0x316   :  { %1484 = vst [vmem:[%s2371_s5 + $0x78] sm:$0xff] %v1453_v41   ;;  %v977_v17 = vadd.f32 %v2269_v43, %v976_v61  ;;  %v1787_v36 = vpop.f32.mrb[105].mxu0 }
 0x317   :  { %v979_v55 = vpop.f32.mrb[106].mxu0 }
 0x318   :  { %v980_v59 = vadd.f32 %v2269_v43, %v979_v55  ;;  %v1788_v60 = vpop.f32.mrb[107].mxu0  ;;  %v1031_v62 = vmax.f32 %v977_v17, 0.0 }
 0x31a   :  { %v1032_v63 = vmax.f32 %v980_v59, 0.0 }
 0x31c   :  { %v1458_v2 = vpack.c.bf16 %v1032_v63, %v1031_v62 }
 0x31d   :  { %v984_v3 = vpop.f32.mrb[108].mxu0 }
 0x31e   :  { %1485 = vst [vmem:[%s2371_s5 + $0x80] sm:$0xff] %v1458_v2   ;;  %v985_v4 = vadd.f32 %v2269_v43, %v984_v3  ;;  %v1791_v5 = vpop.f32.mrb[109].mxu0 }
 0x31f   :  { %v987_v6 = vpop.f32.mrb[110].mxu0 }
 0x320   :  { %v988_v7 = vadd.f32 %v2269_v43, %v987_v6  ;;  %v1792_v8 = vpop.f32.mrb[111].mxu0  ;;  %v1033_v9 = vmax.f32 %v985_v4, 0.0 }
 0x322   :  { %v1034_v10 = vmax.f32 %v988_v7, 0.0 }
 0x324   :  { %v1463_v11 = vpack.c.bf16 %v1034_v10, %v1033_v9 }
 0x325   :  { %v992_v12 = vpop.f32.mrb[112].mxu0 }
 0x326   :  { %1486 = vst [vmem:[%s2371_s5 + $0x88] sm:$0xff] %v1463_v11   ;;  %v993_v13 = vadd.f32 %v2269_v43, %v992_v12  ;;  %v1795_v14 = vpop.f32.mrb[113].mxu0 }
 0x327   :  { %v995_v15 = vpop.f32.mrb[114].mxu0 }
 0x328   :  { %v996_v16 = vadd.f32 %v2269_v43, %v995_v15  ;;  %v1796_v18 = vpop.f32.mrb[115].mxu0  ;;  %v1035_v19 = vmax.f32 %v993_v13, 0.0 }
 0x32a   :  { %v1036_v20 = vmax.f32 %v996_v16, 0.0 }
 0x32c   :  { %v1468_v21 = vpack.c.bf16 %v1036_v20, %v1035_v19 }
 0x32e   :  { %1487 = vst [vmem:[%s2371_s5 + $0x90] sm:$0xff] %v1468_v21  }

</bundles_post_ra>
